<compile_context>
chip_gen: v6e
topology: v6e:2x2x1
jax: 0.10.0
libtpu: 0.0.40
codegen_flags: <defaults>
</compile_context>

<pallas_src>
import functools
from typing import NamedTuple

import jax
import jax.numpy as jnp
from jax.experimental import pallas as pl
from jax.experimental.pallas import tpu as pltpu

LANE = 128
# Encoder K-tile (multiple of 128).  With bf16 operands a (TK, Dp<=1024)
# weight tile is <=1 MiB, so 2x double-buffered tiles + the tiny resident
# mapper/classifier weights fit comfortably under the default scoped VMEM on
# every generation (v5e 16 MiB, v6e/v7x 32 MiB).  Raise TK (and
# vmem_limit_bytes via pltpu.CompilerParams) on v6e if deeper tiles are wanted.
TK = 512


class Meta(NamedTuple):
    P: int
    Pp: int
    tk: int
    D: int
    Dp: int
    C: int
    Cp: int
    ND: int


def _round_up(n, m):
    return ((n + m - 1) // m) * m


# ----------------------------- fused Pallas kernel ---------------------------

def _fused_forward_kernel(x_ref, w_enc_ref, b_enc_ref,
                          w_map_ref, b_map_ref,
                          w_cls_ref, b_cls_ref,
                          diffs_ref,
                          logits_ref, reg_ref,
                          acc_ref, lhs_ref):
    """Fused clip_mlp_orth.forward.

    Grid axis 0 = K (flattened-pixel) reduction of the encoder matmul.
      per step : acc += x_tile(bf16) @ w_enc_tile(bf16)   (f32 accumulate)
      last step: normalize -> mapper(vf ++ diffs) -> classifier
    All intermediates stay in VMEM; no HBM round-trips between stages.
    """
    k = pl.program_id(0)

    @pl.when(k == 0)
    def _():
        acc_ref[...] = jnp.zeros_like(acc_ref)

    # TODO(synk): the frozen CLIP ViT image encoder is not translated; it is
    # replaced by a deterministic linear projection of the flattened pixels.
    acc_ref[...] += jnp.dot(x_ref[...], w_enc_ref[...],
                            preferred_element_type=jnp.float32)

    @pl.when(k == pl.num_programs(0) - 1)
    def _():
        # Stage 2: L2 normalize in f32; padded lanes are exact zeros so they
        # do not contribute.  Matches `vf / vf.norm(dim=-1, keepdim=True)`.
        feats = acc_ref[...] + b_enc_ref[...]
        inv_norm = jax.lax.rsqrt(
            jnp.sum(feats * feats, axis=-1, keepdims=True))
        vf = feats * inv_norm

        # Stage 3: mapper applied to both normalized features and diffs with a
        # single MXU push (rows staged into one VMEM LHS buffer).
        B = logits_ref.shape[0]
        lhs_ref[:B, :] = vf
        lhs_ref[B:, :] = diffs_ref[...].astype(jnp.float32)
        mapped = (jnp.dot(lhs_ref[...].astype(jnp.bfloat16), w_map_ref[...],
                          preferred_element_type=jnp.float32)
                  + b_map_ref[...])
        reg_ref[...] = mapped[B:, :]

        # Stage 4: classifier.
        logits_ref[...] = (jnp.dot(mapped[:B, :].astype(jnp.bfloat16),
                                   w_cls_ref[...],
                                   preferred_element_type=jnp.float32)
                           + b_cls_ref[...])


# --------------------------- one-time param prep ------------------------------

def prepare_params(params):
    """One-time layout plumbing, hoisted out of the forward / jit path:
       - transpose nn.Linear weights (out,in) -> (in,out)  (no in-kernel .T),
       - zero-pad feature / class / K dims to tile-aligned sizes,
       - cast MXU operands to bf16 (biases stay f32; accumulation is f32).
    Returns (arrays, meta) where meta is a hashable NamedTuple of static ints.
    """
    w_enc = jnp.asarray(params["w_enc"], jnp.float32)   # (P, D) stand-in encoder
    b_enc = jnp.asarray(params["b_enc"], jnp.float32)   # (D,)
    w_map = jnp.asarray(params["w_map"], jnp.float32)   # (D, D) torch (out,in)
    b_map = jnp.asarray(params["b_map"], jnp.float32)   # (D,)
    w_cls = jnp.asarray(params["w_cls"], jnp.float32)   # (C, D) torch (out,in)
    b_cls = jnp.asarray(params["b_cls"], jnp.float32)   # (C,)
    diffs = jnp.asarray(params["diffs"], jnp.float32)   # (ND, D)

    P, D = w_enc.shape
    C = w_cls.shape[0]
    ND = diffs.shape[0]
    Dp = max(_round_up(D, LANE), LANE)
    Cp = max(_round_up(C, LANE), LANE)
    tk = TK
    Pp = _round_up(P, tk)

    # TODO(synk): for v5e/v6e the frozen w_enc could additionally be int8
    # quantized (dequant in-kernel) for another ~2x off the weight-streaming
    # roofline; not drop-in on v7x (fp8-only MXU), so kept bf16 here.
    w_enc_p = jnp.zeros((Pp, Dp), jnp.bfloat16).at[:P, :D].set(
        w_enc.astype(jnp.bfloat16))
    b_enc_p = jnp.zeros((1, Dp), jnp.float32).at[0, :D].set(b_enc)
    w_map_p = jnp.zeros((Dp, Dp), jnp.bfloat16).at[:D, :D].set(
        w_map.T.astype(jnp.bfloat16))
    b_map_p = jnp.zeros((1, Dp), jnp.float32).at[0, :D].set(b_map)
    w_cls_p = jnp.zeros((Dp, Cp), jnp.bfloat16).at[:D, :C].set(
        w_cls.T.astype(jnp.bfloat16))
    b_cls_p = jnp.zeros((1, Cp), jnp.float32).at[0, :C].set(b_cls)
    diffs_p = jnp.zeros((ND, Dp), jnp.bfloat16).at[:, :D].set(
        diffs.astype(jnp.bfloat16))

    arrays = dict(w_enc=w_enc_p, b_enc=b_enc_p,
                  w_map=w_map_p, b_map=b_map_p,
                  w_cls=w_cls_p, b_cls=b_cls_p,
                  diffs=diffs_p)
    meta = Meta(P=P, Pp=Pp, tk=tk, D=D, Dp=Dp, C=C, Cp=Cp, ND=ND)
    return arrays, meta


# ------------------------------- forward pass --------------------------------

def clip_mlp_orth_forward(images, arrays, meta):
    """Reproduces clip_mlp_orth.forward:
       returns (None, classifier(mapper(vf / ||vf||)), mapper(diffs))."""
    B = images.shape[0]
    x = images.reshape(B, -1).astype(jnp.bfloat16)
    if meta.Pp != meta.P:
        x = jnp.pad(x, ((0, 0), (0, meta.Pp - meta.P)))

    grid_k = meta.Pp // meta.tk
    tk, Dp, Cp, ND = meta.tk, meta.Dp, meta.Cp, meta.ND

    flops = (2 * B * meta.Pp * Dp           # encoder matmul
             + 2 * (B + ND) * Dp * Dp       # mapper on features ++ diffs
             + 2 * B * Dp * Cp)             # classifier
    bytes_accessed = (2 * (x.size + arrays["w_enc"].size + arrays["w_map"].size
                           + arrays["w_cls"].size + arrays["diffs"].size)
                      + 4 * (arrays["b_enc"].size + arrays["b_map"].size
                             + arrays["b_cls"].size + B * Cp + ND * Dp))

    logits_p, reg_p = pl.pallas_call(
        _fused_forward_kernel,
        grid=(grid_k,),
        in_specs=[
            pl.BlockSpec((B, tk), lambda k: (0, k)),      # x: K-tiled
            pl.BlockSpec((tk, Dp), lambda k: (k, 0)),     # w_enc: K-tiled stream
            pl.BlockSpec((1, Dp), lambda k: (0, 0)),      # b_enc (resident)
            pl.BlockSpec((Dp, Dp), lambda k: (0, 0)),     # w_map (resident)
            pl.BlockSpec((1, Dp), lambda k: (0, 0)),      # b_map
            pl.BlockSpec((Dp, Cp), lambda k: (0, 0)),     # w_cls (resident)
            pl.BlockSpec((1, Cp), lambda k: (0, 0)),      # b_cls
            pl.BlockSpec((ND, Dp), lambda k: (0, 0)),     # diffs (resident)
        ],
        out_specs=[
            pl.BlockSpec((B, Cp), lambda k: (0, 0)),      # logits
            pl.BlockSpec((ND, Dp), lambda k: (0, 0)),     # regularizer
        ],
        out_shape=(jax.ShapeDtypeStruct((B, Cp), jnp.float32),
                   jax.ShapeDtypeStruct((ND, Dp), jnp.float32)),
        scratch_shapes=[
            pltpu.VMEM((B, Dp), jnp.float32),             # f32 encoder accumulator
            pltpu.VMEM((B + ND, Dp), jnp.float32),        # mapper LHS staging
        ],
        compiler_params=pltpu.CompilerParams(
            dimension_semantics=("arbitrary",)),          # K reduction axis
        cost_estimate=pl.CostEstimate(flops=flops, transcendentals=B,
                                      bytes_accessed=bytes_accessed),
    )(x, arrays["w_enc"], arrays["b_enc"], arrays["w_map"], arrays["b_map"],
      arrays["w_cls"], arrays["b_cls"], arrays["diffs"])

    logits = logits_p[:, :meta.C]
    regularizer = reg_p[:, :meta.D]
    return None, logits, regularizer


# ---------------------------------- main --------------------------------------

if __name__ == "__main__":
    # Small synthetic shapes consistent with the module's forward.
    B, Cimg, H, W = 2, 4, 16, 16        # images (NCHW)
    FEAT_DIM = 32                        # clip_model.visual.output_dim
    N_CLASSES = 8                        # len(class_names)
    N_DOMAINS = 4                        # domain_diffs rows
    P = Cimg * H * W                     # 1024 -> 2 K-tiles of 512

    key = jax.random.PRNGKey(0)
    (k_img, k_wenc, k_wmap, k_bmap,
     k_wcls, k_bcls, k_diff) = jax.random.split(key, 7)

    images = jax.random.normal(k_img, (B, Cimg, H, W), dtype=jnp.float32)

    # Stand-in for the frozen CLIP image encoder.
    w_enc = 0.02 * jax.random.normal(k_wenc, (P, FEAT_DIM), dtype=jnp.float32)
    b_enc = jnp.zeros((FEAT_DIM,), dtype=jnp.float32)

    # mapper = nn.Linear(FEAT_DIM, FEAT_DIM); classifier = nn.Linear(FEAT_DIM, C)
    bound = 1.0 / (FEAT_DIM ** 0.5)
    w_map = jax.random.uniform(k_wmap, (FEAT_DIM, FEAT_DIM),
                               minval=-bound, maxval=bound, dtype=jnp.float32)
    b_map = jax.random.uniform(k_bmap, (FEAT_DIM,),
                               minval=-bound, maxval=bound, dtype=jnp.float32)
    w_cls = jax.random.uniform(k_wcls, (N_CLASSES, FEAT_DIM),
                               minval=-bound, maxval=bound, dtype=jnp.float32)
    b_cls = jax.random.uniform(k_bcls, (N_CLASSES,),
                               minval=-bound, maxval=bound, dtype=jnp.float32)

    diffs = jax.random.normal(k_diff, (N_DOMAINS, FEAT_DIM), dtype=jnp.float32)

    params = {"w_enc": w_enc, "b_enc": b_enc,
              "w_map": w_map, "b_map": b_map,
              "w_cls": w_cls, "b_cls": b_cls,
              "diffs": diffs}

    # One-time layout plumbing (outside the jitted forward path).
    arrays, meta = prepare_params(params)

    forward = jax.jit(clip_mlp_orth_forward, static_argnums=(2,))
    none_out, logits, reg = forward(images, arrays, meta)
    jax.block_until_ready((logits, reg))

    assert none_out is None
    assert logits.shape == (B, N_CLASSES)
    assert reg.shape == (N_DOMAINS, FEAT_DIM)

    # Pure-JAX f32 reference of the same forward (stand-in encoder included).
    x_flat = images.reshape(B, -1)
    feats_ref = x_flat @ w_enc + b_enc
    vf_ref = feats_ref / jnp.linalg.norm(feats_ref, axis=-1, keepdims=True)
    aux_ref = vf_ref @ w_map.T + b_map
    logits_ref = aux_ref @ w_cls.T + b_cls
    reg_ref = diffs @ w_map.T + b_map
    # bf16 MXU operands with f32 accumulation -> slightly looser tolerance
    # than a pure-f32 kernel.
    assert jnp.allclose(logits, logits_ref, rtol=2e-2, atol=2e-2)
    assert jnp.allclose(reg, reg_ref, rtol=2e-2, atol=2e-2)

    print("KERNEL_OK")
</pallas_src>

<mosaic_0001>
module attributes {stable_mosaic.version = 11 : i64} {
  func.func @_fused_forward_kernel(%arg0: i32, %arg1: memref<2x512xbf16, #tpu.memory_space<vmem>>, %arg2: memref<512x128xbf16, #tpu.memory_space<vmem>>, %arg3: memref<1x128xf32, #tpu.memory_space<vmem>>, %arg4: memref<128x128xbf16, #tpu.memory_space<vmem>>, %arg5: memref<1x128xf32, #tpu.memory_space<vmem>>, %arg6: memref<128x128xbf16, #tpu.memory_space<vmem>>, %arg7: memref<1x128xf32, #tpu.memory_space<vmem>>, %arg8: memref<4x128xbf16, #tpu.memory_space<vmem>>, %arg9: memref<2x128xf32, #tpu.memory_space<vmem>>, %arg10: memref<4x128xf32, #tpu.memory_space<vmem>>, %arg11: memref<2x128xf32, #tpu.memory_space<vmem>>, %arg12: memref<6x128xf32, #tpu.memory_space<vmem>>) attributes {dimension_semantics = [#tpu.dimension_semantics<arbitrary>], iteration_bounds = array<i64: 2>, scalar_prefetch = 0 : i64, scratch_operands = 2 : i64, tpu.core_type = #tpu.core_type<tc>, window_params = [{transform_indices = @transform_0, window_bounds = array<i64: 2, 512>}, {transform_indices = @transform_1, window_bounds = array<i64: 512, 128>}, {pipeline_mode = #tpu.pipeline_mode<synchronous>, transform_indices = @transform_2, window_bounds = array<i64: 1, 128>}, {pipeline_mode = #tpu.pipeline_mode<synchronous>, transform_indices = @transform_3, window_bounds = array<i64: 128, 128>}, {pipeline_mode = #tpu.pipeline_mode<synchronous>, transform_indices = @transform_4, window_bounds = array<i64: 1, 128>}, {pipeline_mode = #tpu.pipeline_mode<synchronous>, transform_indices = @transform_5, window_bounds = array<i64: 128, 128>}, {pipeline_mode = #tpu.pipeline_mode<synchronous>, transform_indices = @transform_6, window_bounds = array<i64: 1, 128>}, {pipeline_mode = #tpu.pipeline_mode<synchronous>, transform_indices = @transform_7, window_bounds = array<i64: 4, 128>}, {pipeline_mode = #tpu.pipeline_mode<synchronous>, transform_indices = @transform_8, window_bounds = array<i64: 2, 128>}, {pipeline_mode = #tpu.pipeline_mode<synchronous>, transform_indices = @transform_9, window_bounds = array<i64: 4, 128>}]} {
    %c0_i32 = arith.constant 0 : i32
    %0 = arith.cmpi eq, %arg0, %c0_i32 : i32
    %1 = arith.extui %0 : i1 to i32
    %c0_i32_0 = arith.constant 0 : i32
    %2 = arith.cmpi ne, %1, %c0_i32_0 : i32
    scf.if %2 {
      %cst_9 = arith.constant 0.000000e+00 : f32
      %12 = vector.broadcast %cst_9 : f32 to vector<2x128xf32>
      %c0_10 = arith.constant 0 : index
      %c0_11 = arith.constant 0 : index
      %13 = vector.load %arg11[%c0_10, %c0_11] : memref<2x128xf32, #tpu.memory_space<vmem>>, vector<2x128xf32>
      tpu.vector_store %arg11[%c0_10, %c0_11], %12 {strides = array<i32>} : memref<2x128xf32, #tpu.memory_space<vmem>>, vector<2x128xf32>,
    } else {
    }
    %c0 = arith.constant 0 : index
    %c0_1 = arith.constant 0 : index
    %3 = vector.load %arg11[%c0, %c0_1] : memref<2x128xf32, #tpu.memory_space<vmem>>, vector<2x128xf32>
    %c0_2 = arith.constant 0 : index
    %c0_3 = arith.constant 0 : index
    %4 = vector.load %arg1[%c0_2, %c0_3] : memref<2x512xbf16, #tpu.memory_space<vmem>>, vector<2x512xbf16>
    %c0_4 = arith.constant 0 : index
    %c0_5 = arith.constant 0 : index
    %5 = vector.load %arg2[%c0_4, %c0_5] : memref<512x128xbf16, #tpu.memory_space<vmem>>, vector<512x128xbf16>
    %cst = arith.constant dense<0.000000e+00> : vector<2x128xf32>
    %6 = tpu.matmul %4, %5, %cst {dimension_numbers = #tpu.dot_dimension_numbers<[1], [0], [0], [1], [0, 0, 1, 1], [], []>} : vector<2x512xbf16>, vector<512x128xbf16>, vector<2x128xf32> -> vector<2x128xf32>
    %7 = arith.addf %3, %6 : vector<2x128xf32>
    %c0_6 = arith.constant 0 : index
    %c0_7 = arith.constant 0 : index
    %8 = vector.load %arg11[%c0_6, %c0_7] : memref<2x128xf32, #tpu.memory_space<vmem>>, vector<2x128xf32>
    tpu.vector_store %arg11[%c0_6, %c0_7], %7 {strides = array<i32>} : memref<2x128xf32, #tpu.memory_space<vmem>>, vector<2x128xf32>,
    %c1_i32 = arith.constant 1 : i32
    %9 = arith.cmpi eq, %arg0, %c1_i32 : i32
    %10 = arith.extui %9 : i1 to i32
    %c0_i32_8 = arith.constant 0 : i32
    %11 = arith.cmpi ne, %10, %c0_i32_8 : i32
    scf.if %11 {
      %c0_9 = arith.constant 0 : index
      %c0_10 = arith.constant 0 : index
      %12 = vector.load %arg11[%c0_9, %c0_10] : memref<2x128xf32, #tpu.memory_space<vmem>>, vector<2x128xf32>
      %c0_11 = arith.constant 0 : index
      %c0_12 = arith.constant 0 : index
      %13 = vector.load %arg3[%c0_11, %c0_12] : memref<1x128xf32, #tpu.memory_space<vmem>>, vector<1x128xf32>
      %14 = vector.broadcast %13 : vector<1x128xf32> to vector<2x128xf32>
      %15 = arith.addf %12, %14 : vector<2x128xf32>
      %16 = arith.mulf %15, %15 : vector<2x128xf32>
      %cst_13 = arith.constant dense<0.000000e+00> : vector<2xf32>
      %17 = vector.multi_reduction <add>, %16, %cst_13 [1] : vector<2x128xf32> to vector<2xf32>
      %18 = vector.shape_cast %17 : vector<2xf32> to vector<2x1xf32>
      %19 = math.rsqrt %18 : vector<2x1xf32>
      %20 = vector.broadcast %19 : vector<2x1xf32> to vector<2x128xf32>
      %21 = arith.mulf %15, %20 : vector<2x128xf32>
      %c0_14 = arith.constant 0 : index
      %c0_15 = arith.constant 0 : index
      %22 = vector.load %arg12[%c0_14, %c0_15] : memref<6x128xf32, #tpu.memory_space<vmem>>, vector<2x128xf32>
      tpu.vector_store %arg12[%c0_14, %c0_15], %21 {strides = array<i32>} : memref<6x128xf32, #tpu.memory_space<vmem>>, vector<2x128xf32>,
      %c0_16 = arith.constant 0 : index
      %c0_17 = arith.constant 0 : index
      %23 = vector.load %arg8[%c0_16, %c0_17] : memref<4x128xbf16, #tpu.memory_space<vmem>>, vector<4x128xbf16>
      %24 = arith.extf %23 : vector<4x128xbf16> to vector<4x128xf32>
      %c2 = arith.constant 2 : index
      %c0_18 = arith.constant 0 : index
      %25 = vector.load %arg12[%c2, %c0_18] : memref<6x128xf32, #tpu.memory_space<vmem>>, vector<4x128xf32>
      tpu.vector_store %arg12[%c2, %c0_18], %24 {strides = array<i32>} : memref<6x128xf32, #tpu.memory_space<vmem>>, vector<4x128xf32>,
      %c0_19 = arith.constant 0 : index
      %c0_20 = arith.constant 0 : index
      %26 = vector.load %arg12[%c0_19, %c0_20] : memref<6x128xf32, #tpu.memory_space<vmem>>, vector<6x128xf32>
      %27 = arith.truncf %26 : vector<6x128xf32> to vector<6x128xbf16>
      %c0_21 = arith.constant 0 : index
      %c0_22 = arith.constant 0 : index
      %28 = vector.load %arg4[%c0_21, %c0_22] : memref<128x128xbf16, #tpu.memory_space<vmem>>, vector<128x128xbf16>
      %cst_23 = arith.constant dense<0.000000e+00> : vector<6x128xf32>
      %29 = tpu.matmul %27, %28, %cst_23 {dimension_numbers = #tpu.dot_dimension_numbers<[1], [0], [0], [1], [0, 0, 1, 1], [], []>} : vector<6x128xbf16>, vector<128x128xbf16>, vector<6x128xf32> -> vector<6x128xf32>
      %c0_24 = arith.constant 0 : index
      %c0_25 = arith.constant 0 : index
      %30 = vector.load %arg5[%c0_24, %c0_25] : memref<1x128xf32, #tpu.memory_space<vmem>>, vector<1x128xf32>
      %31 = vector.broadcast %30 : vector<1x128xf32> to vector<6x128xf32>
      %32 = arith.addf %29, %31 : vector<6x128xf32>
      %33 = vector.extract_strided_slice %32 {offsets = [2, 0], sizes = [4, 128], strides = [1, 1]} : vector<6x128xf32> to vector<4x128xf32>
      %c0_26 = arith.constant 0 : index
      %c0_27 = arith.constant 0 : index
      %34 = vector.load %arg10[%c0_26, %c0_27] : memref<4x128xf32, #tpu.memory_space<vmem>>, vector<4x128xf32>
      tpu.vector_store %arg10[%c0_26, %c0_27], %33 {strides = array<i32>} : memref<4x128xf32, #tpu.memory_space<vmem>>, vector<4x128xf32>,
      %35 = vector.extract_strided_slice %32 {offsets = [0, 0], sizes = [2, 128], strides = [1, 1]} : vector<6x128xf32> to vector<2x128xf32>
      %36 = arith.truncf %35 : vector<2x128xf32> to vector<2x128xbf16>
      %c0_28 = arith.constant 0 : index
      %c0_29 = arith.constant 0 : index
      %37 = vector.load %arg6[%c0_28, %c0_29] : memref<128x128xbf16, #tpu.memory_space<vmem>>, vector<128x128xbf16>
      %cst_30 = arith.constant dense<0.000000e+00> : vector<2x128xf32>
      %38 = tpu.matmul %36, %37, %cst_30 {dimension_numbers = #tpu.dot_dimension_numbers<[1], [0], [0], [1], [0, 0, 1, 1], [], []>} : vector<2x128xbf16>, vector<128x128xbf16>, vector<2x128xf32> -> vector<2x128xf32>
      %c0_31 = arith.constant 0 : index
      %c0_32 = arith.constant 0 : index
      %39 = vector.load %arg7[%c0_31, %c0_32] : memref<1x128xf32, #tpu.memory_space<vmem>>, vector<1x128xf32>
      %40 = vector.broadcast %39 : vector<1x128xf32> to vector<2x128xf32>
      %41 = arith.addf %38, %40 : vector<2x128xf32>
      %c0_33 = arith.constant 0 : index
      %c0_34 = arith.constant 0 : index
      %42 = vector.load %arg9[%c0_33, %c0_34] : memref<2x128xf32, #tpu.memory_space<vmem>>, vector<2x128xf32>
      tpu.vector_store %arg9[%c0_33, %c0_34], %41 {strides = array<i32>} : memref<2x128xf32, #tpu.memory_space<vmem>>, vector<2x128xf32>,
    } else {
    }
    return
  }
  func.func @transform_0(%arg0: i32) -> (i32, i32) {
    %c0_i32 = arith.constant 0 : i32
    %c0_i32_0 = arith.constant 0 : i32
    return %c0_i32, %arg0 : i32, i32
  }
  func.func @transform_1(%arg0: i32) -> (i32, i32) {
    %c0_i32 = arith.constant 0 : i32
    %c0_i32_0 = arith.constant 0 : i32
    return %arg0, %c0_i32 : i32, i32
  }
  func.func @transform_2(%arg0: i32) -> (i32, i32) {
    %c0_i32 = arith.constant 0 : i32
    %c0_i32_0 = arith.constant 0 : i32
    %c0_i32_1 = arith.constant 0 : i32
    return %c0_i32, %c0_i32_0 : i32, i32
  }
  func.func @transform_3(%arg0: i32) -> (i32, i32) {
    %c0_i32 = arith.constant 0 : i32
    %c0_i32_0 = arith.constant 0 : i32
    %c0_i32_1 = arith.constant 0 : i32
    return %c0_i32, %c0_i32_0 : i32, i32
  }
  func.func @transform_4(%arg0: i32) -> (i32, i32) {
    %c0_i32 = arith.constant 0 : i32
    %c0_i32_0 = arith.constant 0 : i32
    %c0_i32_1 = arith.constant 0 : i32
    return %c0_i32, %c0_i32_0 : i32, i32
  }
  func.func @transform_5(%arg0: i32) -> (i32, i32) {
    %c0_i32 = arith.constant 0 : i32
    %c0_i32_0 = arith.constant 0 : i32
    %c0_i32_1 = arith.constant 0 : i32
    return %c0_i32, %c0_i32_0 : i32, i32
  }
  func.func @transform_6(%arg0: i32) -> (i32, i32) {
    %c0_i32 = arith.constant 0 : i32
    %c0_i32_0 = arith.constant 0 : i32
    %c0_i32_1 = arith.constant 0 : i32
    return %c0_i32, %c0_i32_0 : i32, i32
  }
  func.func @transform_7(%arg0: i32) -> (i32, i32) {
    %c0_i32 = arith.constant 0 : i32
    %c0_i32_0 = arith.constant 0 : i32
    %c0_i32_1 = arith.constant 0 : i32
    return %c0_i32, %c0_i32_0 : i32, i32
  }
  func.func @transform_8(%arg0: i32) -> (i32, i32) {
    %c0_i32 = arith.constant 0 : i32
    %c0_i32_0 = arith.constant 0 : i32
    %c0_i32_1 = arith.constant 0 : i32
    return %c0_i32, %c0_i32_0 : i32, i32
  }
  func.func @transform_9(%arg0: i32) -> (i32, i32) {
    %c0_i32 = arith.constant 0 : i32
    %c0_i32_0 = arith.constant 0 : i32
    %c0_i32_1 = arith.constant 0 : i32
    return %c0_i32, %c0_i32_0 : i32, i32
  }
}

</mosaic_0001>

<bundles_post_ra>
// kernel: clip_mlp_orth_forward.1
= control target key start
LH: loop header
LB: loop body
LE: loop exit
PB: predicated region body
PF: predicated region fallthrough
CT: control target
= control target key end

     0   :  { %15 = vsyncpa [#allocation5], 0  ;;  %s1759_s0 = inlined_call_operand.vmem [shape: bf16[2,1024], index: 0, kind: input, shape index: {}]   ;;  %s1760_s1 = inlined_call_operand.hbm [shape: bf16[1024,128], index: 1, kind: input, shape index: {}]   ;;  %s1761_s2 = inlined_call_operand.vmem [shape: f32[1,128], index: 2, kind: input, shape index: {}]   ;;  %s1762_s3 = inlined_call_operand.vmem [shape: bf16[128,128], index: 3, kind: input, shape index: {}]   ;;  %s1763_s4 = inlined_call_operand.vmem [shape: f32[1,128], index: 4, kind: input, shape index: {}]   ;;  %s1764_s5 = inlined_call_operand.vmem [shape: bf16[128,128], index: 5, kind: input, shape index: {}]   ;;  %s1765_s6 = inlined_call_operand.vmem [shape: f32[1,128], index: 6, kind: input, shape index: {}]   ;;  %s1766_s7 = inlined_call_operand.vmem [shape: bf16[4,128], index: 7, kind: input, shape index: {}]   ;;  %s1767_s8 = inlined_call_operand.hbm [shape: f32[2,128], index: 8, kind: output, shape index: {0}]   ;;  %s1768_s9 = inlined_call_operand.hbm [shape: f32[4,128], index: 9, kind: output, shape index: {1}]  }
   0x1   :  { %17 = vsyncpa [#allocation5 + $0x1], 0 }
   0x2   :  { %18 = vsyncpa [#allocation6], 0 }
   0x3   :  { %19 = vsyncpa [#allocation9], 0  ;;  %s1532_s30 = smov 0   ;;  %s1534_s10 = smov 0  }
   0x4   :  { %s1536_s11 = smov 0   ;;  %s1538_s12 = smov 0  }
   0x5 LB: > { %s1551_s13 = sadd.s32 4294967295, %s1471_s12   ;;  %s1554_s14 = sadd.s32 1, %s1471_s12   ;;  %s1471_s12 = sphi %s1538_s12, %s1777_s12   ;;  %s1467_s11 = sphi %s1536_s11, %s1776_s11   ;;  %s1463_s10 = sphi %s1534_s10, %s1775_s10   ;;  %s1459_s30 = sphi %s1532_s30, %s1774_s30  }
   0x6   : > { %s55_s15 = ssub.s32 %s1471_s12, %s1554_s14  ;;  %s58_s16 = sadd.s32 1, %s1467_s11 }
   0x7   : > { %p56_p0 = scmp.eq.s32.totalorder %s55_s15, 0  ;;  %p65_p1 = scmp.ne.s32.totalorder %s1467_s11, %s1463_s10 }
   0x8   : > { %p66_p2 = scmp.eq.s32.totalorder %s1471_s12, 0  ;;  %p71_p3 = scmp.ne.s32.totalorder %s1463_s10, %s1459_s30 }
   0x9   : > { %s1564_s17 = scalar_select %p56_p0, %s1467_s11, %s58_s16  }
   0xa   : > { %p67_p4 = por %p66_p2, %p65_p1  ;;  %p72_p5 = scmp.eq.s32.totalorder %s1551_s13, 0 }
   0xb   : > { %p1258_p6 = scmp.lt.s32.totalorder %s1471_s12, 2  ;;  %s289_s19 = sand.u32 1, %s1467_s11  }
   0xc   : > { %p1568_p7 = por %p72_p5, %p71_p3  ;;  %s1075_s20 = sshll.u32 %s289_s19, 8 }
   0xd   : > { %s1141_s21 = sshll.u32 %s1471_s12, 12  ;;  %s293_s25 = scalar_lea.vmem [#allocation4], %s1075_s20 }
   0xe   : > { %s1770_s18 = scalar_select %p1568_p7, 1, 0 }
   0xf   : > { %s1577_s24 = scalar_lea.hbm %s1760_s1, %s1141_s21  ;;  %s300_s26 = sshll.u32 %s293_s25, 4  ;;  %s1579_s26 = int_to_ptr.vmem [resolvable:$true] %s300_s26 }
  0x10   : > { %p1581_p8 = pnand %p1258_p6, %p67_p4  ;;  %s1586_s28 = scalar_lea.sflag [#allocation5], %s289_s19 }
  0x11   : > { %s1353_s29 = scalar_lea.hbm %s1577_s24, 4096  ;;  %s1358_s16 = scalar_lea.hbm %s1760_s1, 8192 }
  0x12   : > { %p1354_p10 = scmp.ne.s32.totalorder %s1577_s24, %s1353_s29  ;;  %p1355_p11 = pneg %p1581_p8 }
  0x13   : > { %p1359_p0 = scmp.lt.s32.totalorder %s1577_s24, %s1760_s1  ;;  %p1360_p1 = scmp.lt.s32.totalorder %s1358_s16, %s1353_s29 }
  0x14   : > { %p1356_p12 = pnand %p1355_p11, %p1354_p10 }
  0x15   : > { %p1361_p2 = por %p1360_p1, %p1359_p0 }
  0x16   : > { %p1357_p13 = pneg %p1356_p12 }
  0x18   : > { %p1362_p3 = pnand %p1361_p2, %p1357_p13 }
  0x1a   : > { %1365 = shalt.err (!%p1362_p3)
}
  0x1b   : > { %s1366_s19 = scalar_lea.vmem %s1579_s26, 4096  ;;  %s1473_s22 = smov [#allocation4]  }
  0x1c   : > { %p1367_p4 = scmp.ne.s32.totalorder %s1579_s26, %s1366_s19  ;;  %s1371_s23 = sshll.u32 %s1473_s22, 4  ;;  %s1372_s23 = int_to_ptr.vmem [resolvable:$false] %s1371_s23 }
  0x1d   : > { %s1373_s25 = scalar_lea.vmem %s1372_s23, 8192  ;;  %p1374_p10 = scmp.lt.s32.totalorder %s1579_s26, %s1372_s23 }
  0x1e   : > { %p1369_p5 = pnand %p1367_p4, %p1355_p11  ;;  %p1375_p12 = scmp.lt.s32.totalorder %s1373_s25, %s1366_s19 }
  0x20   : > { %p1370_p6 = pneg %p1369_p5  ;;  %p1376_p9 = por %p1375_p12, %p1374_p10 }
  0x22   : > { %p1377_p7 = pnand %p1376_p9, %p1370_p6 }
  0x24   : > { %1380 = shalt.err (!%p1377_p7)
}
  0x25   : > { %s1474_s29 = smov 64   ;;  %s1475_s30 = smov 4  }
  0x26   : > { %1257 = dma.hbm_to_vmem [thread:$0]  (!%p1581_p8), %s1577_s24, 4096, %s1579_s26, %s1586_s28, %s1474_s29, %s1474_s29, %s1475_s30  }
  0x27   : > { %p308_p11 = scmp.lt.s32.totalorder %s1471_s12, 3  ;;  %p1772_p13 = scmp.ge.s32.totalorder %s1471_s12, 1 }
  0x29   : > { %p309_p0 = pnand %p1772_p13, %p308_p11 }
  0x2a   : > { %s314_s15 = sand.u32 (!%p309_p0), 1, %s1463_s10   ;;  %p1773_p7 = scmp.ne.s32.totalorder (!%p309_p0), %s1770_s18, 0 }
  0x2b   : > { %312 = sbr.rel (%p309_p0) target bundleno = 895 (0x37f), region = 52  ;;  %s1079_s16 = sshll.u32 (!%p309_p0), %s314_s15, 8 }
  0x2c   : > { %s315_s20 = scalar_lea.sflag (!%p309_p0), [#allocation5], %s314_s15  ;;  %s1611_s21 = scalar_lea.vmem (!%p309_p0), [#allocation4], %s1079_s16 }
  0x30   : > { %1446 = dma.done.wait (%p1773_p7), %s315_s20, 4096  }
  0x31   : > { %1448 = vsyncadd (%p1773_p7), %s315_s20, 4294963200  ;;  %s1080_s19 = sshll.u32 %s1551_s13, 2  ;;  %p1081_p8 = scmp.ne.s32.totalorder %s1551_s13, 0 }
  0x32   : > { %p353_p9 = scmp.lt.s32.totalorder %s1080_s19, 7 }
  0x33   : > { %362 = sbr.rel (%p1081_p8) target bundleno = 58 (0x3a), region = 60 }
  0x34   : > { %s1779_s19 = smov (!%p353_p9, %s1080_s19), 7 }
  0x35   : > { %s355_s26 = scalar_lea.vmem %s1759_s0, %s1779_s19 }
  0x38   : > { %v1476_v0 = vmov 0.0  }
  0x39   : > { %363 = vst [vmem:[#allocation2] sm:$0x3] %v1476_v0 }
  0x3a PF: > { %v1303_v1 = vld [vmem:[%s1611_s21 + $0x78] sm:$0xff]   ;;  %v1307_v5 = vld [vmem:[%s1611_s21 + $0x70] sm:$0xff]   ;;  %v1311_v9 = vld [vmem:[%s1611_s21 + $0x68] sm:$0xff]   ;;  %v442_v31 = vlaneseq  ;;  %v1477_v35 = vmov 1966171168   ;;  %p1115_p1 = scmp.ne.s32.totalorder %s1551_s13, 1 }
  0x3b   : > { %v1304_v2 = vld [vmem:[%s1611_s21 + $0xf8] sm:$0xff]   ;;  %1142 = vmatprep.subr.bf16.mxu0 %v1303_v1  ;;  %v1308_v6 = vld [vmem:[%s1611_s21 + $0xf0] sm:$0xff]   ;;  %v1312_v10 = vld [vmem:[%s1611_s21 + $0xe8] sm:$0xff]   ;;  %v440_v36 = vunpack.c.l.s4 %v1477_v35 }
  0x3c   : > { %v1305_v3 = vld [vmem:[%s1611_s21 + $0x38] sm:$0xff]   ;;  %1164 = vmatprep.subr.bf16.mxu1 %v1304_v2  ;;  %v1309_v7 = vld [vmem:[%s1611_s21 + $0x30] sm:$0xff]   ;;  %v1313_v11 = vld [vmem:[%s1611_s21 + $0x28] sm:$0xff]   ;;  %v443_v37 = vshrl.u32 %v442_v31, 7 }
  0x3d   : > { %v1306_v4 = vld [vmem:[%s1611_s21 + $0xb8] sm:$0xff]   ;;  %1143 = vmatpush3.bf16.msra.mxu0 %v1305_v3  ;;  %v1310_v8 = vld [vmem:[%s1611_s21 + $0xb0] sm:$0xff]   ;;  %v1314_v12 = vld [vmem:[%s1611_s21 + $0xa8] sm:$0xff]   ;;  %v441_v39 = vunpack.c.0.s8 %v440_v36 }
  0x3e   : > { %1165 = vmatpush3.bf16.msra.mxu1 %v1306_v4  ;;  %1144 = vmatprep.subr.bf16.mxu0 %v1307_v5  ;;  %v1315_v13 = vld [vmem:[%s1611_s21 + $0x60] sm:$0xff]   ;;  %v1319_v17 = vld [vmem:[%s1611_s21 + $0x58] sm:$0xff]   ;;  %v1323_v21 = vld [vmem:[%s1611_s21 + $0x50] sm:$0xff]  }
  0x3f   : > { %1166 = vmatprep.subr.bf16.mxu1 %v1308_v6  ;;  %v1316_v14 = vld [vmem:[%s1611_s21 + $0xe0] sm:$0xff]   ;;  %v1320_v18 = vld [vmem:[%s1611_s21 + $0xd8] sm:$0xff]   ;;  %v1324_v22 = vld [vmem:[%s1611_s21 + $0xd0] sm:$0xff]   ;;  %v444_v40 = vsub.s32 %v441_v39, %v443_v37 }
  0x40   : > { %v1317_v15 = vld [vmem:[%s1611_s21 + $0x20] sm:$0xff]   ;;  %v1321_v19 = vld [vmem:[%s1611_s21 + $0x18] sm:$0xff]   ;;  %v1325_v23 = vld [vmem:[%s1611_s21 + $0x10] sm:$0xff]  }
  0x41   : > { %1145 = vmatpush3.bf16.msra.mxu0 %v1309_v7  ;;  %v1318_v16 = vld [vmem:[%s1611_s21 + $0xa0] sm:$0xff]   ;;  %v1322_v20 = vld [vmem:[%s1611_s21 + $0x98] sm:$0xff]   ;;  %v1326_v24 = vld [vmem:[%s1611_s21 + $0x90] sm:$0xff]  }
  0x42   : > { %1167 = vmatpush3.bf16.msra.mxu1 %v1310_v8  ;;  %1146 = vmatprep.subr.bf16.mxu0 %v1311_v9  ;;  %v1327_v25 = vld [vmem:[%s1611_s21 + $0x48] sm:$0xff]   ;;  %v1331_v29 = vld [vmem:[%s1611_s21 + $0x40] sm:$0xff]   ;;  %v1082_v34 = vld.sshfl [vmem:[%s355_s26] sm:$0x33 pattern:$0x75316420] }
  0x43   : > { %1168 = vmatprep.subr.bf16.mxu1 %v1312_v10  ;;  %v1328_v26 = vld [vmem:[%s1611_s21 + $0xc8] sm:$0xff]   ;;  %v1332_v30 = vld [vmem:[%s1611_s21 + $0xc0] sm:$0xff]   ;;  %v438_v38 = vcombine.high %v1082_v34, %v1082_v34  ;;  %v445_v42 = vrot.slane %v1082_v34, %v444_v40  ;;  %v364_v52 = vld [vmem:[#allocation2] sm:$0x3] }
  0x44   : > { %v1329_v27 = vld [vmem:[%s1611_s21 + $0x8] sm:$0xff]   ;;  %v1333_v32 = vld [vmem:[%s1611_s21] sm:$0xff]  }
  0x45   : > { %1147 = vmatpush3.bf16.msra.mxu0 %v1313_v11  ;;  %v1330_v28 = vld [vmem:[%s1611_s21 + $0x88] sm:$0xff]   ;;  %v1334_v33 = vld [vmem:[%s1611_s21 + $0x80] sm:$0xff]   ;;  %v452_v41 = vrot.slane %v438_v38, %v444_v40  ;;  %v453_v44 = vcombine.high %v445_v42, %v445_v42 }
  0x46   : > { %1169 = vmatpush3.bf16.msra.mxu1 %v1314_v12  ;;  %1148 = vmatprep.subr.bf16.mxu0 %v1315_v13 }
  0x47   : > { %1170 = vmatprep.subr.bf16.mxu1 %v1316_v14  ;;  %683 = vmatprep.mubr.bf16.mxu0 %v452_v41  ;;  %v454_v43 = vcombine.high %v452_v41, %v452_v41 }
  0x49   : > { %1149 = vmatpush3.bf16.msra.mxu0 %v1317_v15  ;;  %723 = vmatprep.mubr.bf16.mxu1 %v454_v43 }
  0x4a   : > { %1171 = vmatpush3.bf16.msra.mxu1 %v1318_v16  ;;  %1150 = vmatprep.subr.bf16.mxu0 %v1319_v17 }
  0x4b   : > { %1172 = vmatprep.subr.bf16.mxu1 %v1320_v18 }
  0x4d   : > { %1151 = vmatpush3.bf16.msra.mxu0 %v1321_v19 }
  0x4e   : > { %1173 = vmatpush3.bf16.msra.mxu1 %v1322_v20  ;;  %1152 = vmatprep.subr.bf16.mxu0 %v1323_v21 }
  0x4f   : > { %1174 = vmatprep.subr.bf16.mxu1 %v1324_v22 }
  0x51   : > { %1153 = vmatpush3.bf16.msra.mxu0 %v1325_v23 }
  0x52   : > { %1175 = vmatpush3.bf16.msra.mxu1 %v1326_v24  ;;  %1154 = vmatprep.subr.bf16.mxu0 %v1327_v25 }
  0x53   : > { %1176 = vmatprep.subr.bf16.mxu1 %v1328_v26 }
  0x55   : > { %1155 = vmatpush3.bf16.msra.mxu0 %v1329_v27 }
  0x56   : > { %1177 = vmatpush3.bf16.msra.mxu1 %v1330_v28  ;;  %1156 = vmatprep.subr.bf16.mxu0 %v1331_v29 }
  0x57   : > { %1178 = vmatprep.subr.bf16.mxu1 %v1332_v30 }
  0x59   : > { %1157 = vmatpush3.bf16.msra.mxu0 %v1333_v32 }
  0x5a   : > { %1179 = vmatpush3.bf16.msra.mxu1 %v1334_v33 }
  0x5c   : > { %684 = vmatmul.mubr.bf16.vlgmr.msra.gmra.mxu0 %v445_v42 }
  0x5d   : > { %724 = vmatmul.mubr.bf16.vlgmr.msra.gmra.mxu1 %v453_v44 }
 0x11c   : > { %v1158_v45 = vpop.f32.mrf.mxu0 }
 0x11d   : > { %v1180_v46 = vpop.f32.mrf.mxu1 }
 0x11e   : > { %v1159_v47 = vpop.f32.mrf.mxu0 }
 0x11f   : > { %v1160_v48 = vadd.f32 %v1159_v47, %v1158_v45  ;;  %v1181_v49 = vpop.f32.mrf.mxu1 }
 0x120   : > { %v1161_v50 = vpop.f32.mrf.mxu0  ;;  %v1182_v51 = vadd.f32 %v1181_v49, %v1180_v46 }
 0x121   : > { %v1183_v53 = vpop.f32.mrf.mxu1 }
 0x122   : > { %v1162_v54 = vpop.f32.mrf.mxu0  ;;  %v726_v55 = vadd.f32 %v1182_v51, %v1160_v48  ;;  %736 = sbr.rel (%p1115_p1) target bundleno = 867 (0x363), region = 64 }
 0x123   : > { %v1184_v56 = vpop.f32.mrf.mxu1 }
 0x124   : > { %v731_v57 = vadd.f32 %v726_v55, %v364_v52 }
 0x126   : > { %732 = vst [vmem:[#allocation2] sm:$0x3] %v731_v57 }
 0x127   : > { %v1116_v59 = vld [vmem:[%s1761_s2] ss:$0 sm:$0xff]  ;;  %vm747_vm0 = vcmask 1041408   ;;  %v1478_v61 = vmov 0.0   ;;  %v1335_v62 = vld [vmem:[%s1762_s3 + $0x38] sm:$0xff]   ;;  %v1336_v1 = vld [vmem:[%s1762_s3 + $0x30] sm:$0xff]  }
 0x128   : > { %1204 = vmatprep.subr.bf16.mxu0 %v1478_v61  ;;  %1224 = vmatprep.subr.bf16.mxu1 %v1478_v61  ;;  %v1337_v2 = vld [vmem:[%s1762_s3 + $0x28] sm:$0xff]   ;;  %v1338_v3 = vld [vmem:[%s1762_s3 + $0x20] sm:$0xff]   ;;  %v1339_v4 = vld [vmem:[%s1762_s3 + $0x18] sm:$0xff]   ;;  %vm1479_vm1 = vmmov 0  }
 0x129   : > { %1205 = vmatpush3.bf16.msra.mxu0 %v1335_v62  ;;  %v1340_v5 = vld [vmem:[%s1762_s3 + $0x10] sm:$0xff]   ;;  %v754_v6 = vld [vmem:[%s1766_s7] sm:$0x3]  ;;  %v1341_v8 = vld [vmem:[%s1762_s3 + $0x8] sm:$0xff]   ;;  %1220 = vmatprep.mubr.msk.bf16.mxu0 %vm1479_vm1, %v1478_v61 }
 0x12a   : > { %1206 = vmatprep.subr.bf16.mxu0 %v1478_v61  ;;  %v755_v7 = vunpack.c.l.bf16 %v754_v6  ;;  %1240 = vmatprep.mubr.msk.bf16.mxu1 %vm1479_vm1, %v1478_v61  ;;  %v1342_v9 = vld [vmem:[%s1762_s3] sm:$0xff]   ;;  %v1343_v10 = vld [vmem:[%s1764_s5 + $0x38] sm:$0xff]   ;;  %v1344_v11 = vld [vmem:[%s1764_s5 + $0x30] sm:$0xff]  }
 0x12b   : > { %1225 = vmatpush3.bf16.msra.mxu1 %v1343_v10  ;;  %v1345_v12 = vld [vmem:[%s1764_s5 + $0x28] sm:$0xff]   ;;  %v1346_v13 = vld [vmem:[%s1764_s5 + $0x20] sm:$0xff]   ;;  %v1347_v14 = vld [vmem:[%s1764_s5 + $0x18] sm:$0xff]  }
 0x12c   : > { %756 = vst [vmem:[#allocation3 + $0x2] sm:$0xf] %v755_v7  ;;  %1226 = vmatprep.subr.bf16.mxu1 %v1478_v61  ;;  %v1348_v15 = vld [vmem:[%s1764_s5 + $0x10] sm:$0xff]   ;;  %v1349_v16 = vld [vmem:[%s1764_s5 + $0x8] sm:$0xff]   ;;  %v1350_v22 = vld [vmem:[%s1764_s5] sm:$0xff]  }
 0x12d   : > { %v737_v58 = vld [vmem:[#allocation2] sm:$0x3]  ;;  %1207 = vmatpush3.bf16.msra.mxu0 %v1336_v1 }
 0x12e   : > { %v745_v60 = vadd.f32 %v1116_v59, %v737_v58  ;;  %1208 = vmatprep.subr.bf16.mxu0 %v1478_v61  ;;  %v1117_v23 = vld [vmem:[%s1763_s4] ss:$0 sm:$0xff] }
 0x12f   : > { %1227 = vmatpush3.bf16.msra.mxu1 %v1344_v11  ;;  %v1126_v30 = vld [vmem:[%s1765_s6] ss:$0 sm:$0xff] }
 0x130   : > { %v746_v63 = vmul.f32 %v745_v60, %v745_v60  ;;  %1228 = vmatprep.subr.bf16.mxu1 %v1478_v61 }
 0x131   : > { %1209 = vmatpush3.bf16.msra.mxu0 %v1337_v2 }
 0x132   : > { %v748_v0 = vsel %vm747_vm0, %v746_v63, 0.0  ;;  %1210 = vmatprep.subr.bf16.mxu0 %v1478_v61 }
 0x133   : > { %749 = vadd.xlane.f32.xlu0 %v748_v0  ;;  %1229 = vmatpush3.bf16.msra.mxu1 %v1345_v12 }
 0x134   : > { %1230 = vmatprep.subr.bf16.mxu1 %v1478_v61 }
 0x135   : > { %1211 = vmatpush3.bf16.msra.mxu0 %v1338_v3 }
 0x136   : > { %1212 = vmatprep.subr.bf16.mxu0 %v1478_v61 }
 0x137   : > { %1231 = vmatpush3.bf16.msra.mxu1 %v1346_v13 }
 0x138   : > { %1232 = vmatprep.subr.bf16.mxu1 %v1478_v61 }
 0x139   : > { %1213 = vmatpush3.bf16.msra.mxu0 %v1339_v4 }
 0x13a   : > { %1214 = vmatprep.subr.bf16.mxu0 %v1478_v61 }
 0x13b   : > { %1233 = vmatpush3.bf16.msra.mxu1 %v1347_v14 }
 0x13c   : > { %1234 = vmatprep.subr.bf16.mxu1 %v1478_v61 }
 0x13d   : > { %1215 = vmatpush3.bf16.msra.mxu0 %v1340_v5 }
 0x13e   : > { %1216 = vmatprep.subr.bf16.mxu0 %v1478_v61 }
 0x13f   : > { %1235 = vmatpush3.bf16.msra.mxu1 %v1348_v15 }
 0x140   : > { %1236 = vmatprep.subr.bf16.mxu1 %v1478_v61 }
 0x141   : > { %1217 = vmatpush3.bf16.msra.mxu0 %v1341_v8 }
 0x142   : > { %1218 = vmatprep.subr.bf16.mxu0 %v1478_v61 }
 0x143   : > { %1237 = vmatpush3.bf16.msra.mxu1 %v1349_v16 }
 0x144   : > { %1238 = vmatprep.subr.bf16.mxu1 %v1478_v61 }
 0x145   : > { %1219 = vmatpush3.bf16.msra.mxu0 %v1342_v9 }
 0x147   : > { %1239 = vmatpush3.bf16.msra.mxu1 %v1350_v22 }
 0x1bc   : > { %v750_v17 = vpop.xlane.xlu0 %749 }
 0x1bd   : > { %1351 = vrsqrt.f32 %v750_v17 }
 0x1ca   : > { %v1352_v18 = vpop.eup %1351 }
 0x1cb   : > { %v752_v19 = vmul.f32 %v1352_v18, %v745_v60 }
 0x1cd   : > { %753 = vst [vmem:[#allocation3] sm:$0x3] %v752_v19 }
 0x1d4   : > { %v757_v20 = vld [vmem:[#allocation3] sm:$0x3f] }
 0x1d5   : > { %v758_v21 = vpack.c.bf16 %v757_v20, %v757_v20 }
 0x1d7   : > { %1221 = vmatmul.mubr.bf16.vlgmr.msra.gmra.mxu0 %v758_v21 }
 0x297   : > { %v864_v24 = vpop.f32.mrf.mxu0 }
 0x298   : > { %v865_v25 = vadd.f32 %v1117_v23, %v864_v24 }
 0x299   : > { %v1222_v26 = vpop.f32.mrf.mxu0 }
 0x29a   : > { %870 = vst [vmem:[#allocation8 - $0x2] sm:$0x3c] %v865_v25  ;;  %v871_v27 = vpack.c.bf16 %v865_v25, %v865_v25 }
 0x29b   : > { %v867_v28 = vpop.f32.mrf.mxu0 }
 0x29c   : > { %1241 = vmatmul.mubr.bf16.vlgmr.msra.gmra.mxu1 %v871_v27 }
 0x29d   : > { %v1223_v29 = vpop.f32.mrf.mxu0 }
 0x35c   : > { %v977_v31 = vpop.f32.mrf.mxu1 }
 0x35d   : > { %v978_v32 = vadd.f32 %v1126_v30, %v977_v31 }
 0x35e   : > { %v1242_v33 = vpop.f32.mrf.mxu1 }
 0x35f   : > { %983 = vst [vmem:[#allocation7] sm:$0x3] %v978_v32 }
 0x360   : > { %v980_v34 = vpop.f32.mrf.mxu1 }
 0x362   : > { %v1243_v35 = vpop.f32.mrf.mxu1 }
 0x363 PF: > { %p1259_p2 = scmp.eq.s32.totalorder %s1551_s13, 1  ;;  %s1480_s20 = smov [#allocation7]  }
 0x364   : > { %s991_s21 = sshll.u32 %s1480_s20, 4  ;;  %s1481_s19 = smov [#allocation8]   ;;  %s992_s21 = int_to_ptr.vmem [resolvable:$true] %s991_s21 }
 0x365   : > { %s1002_s12 = sshll.u32 %s1481_s19, 4  ;;  %s1381_s24 = scalar_lea.vmem %s992_s21, 32  ;;  %s1003_s12 = int_to_ptr.vmem [resolvable:$true] %s1002_s12 }
 0x366   : > { %p1382_p3 = scmp.ne.s32.totalorder %s992_s21, %s1381_s24  ;;  %p1388_p6 = scmp.lt.s32.totalorder %s992_s21, %s992_s21 }
 0x367   : > { %p1389_p10 = scmp.lt.s32.totalorder %s1381_s24, %s1381_s24 }
 0x368   : > { %p1383_p4 = pnand %p1382_p3, %p1259_p2 }
 0x369   : > { %p1390_p12 = por %p1389_p10, %p1388_p6 }
 0x36a   : > { %p1384_p5 = pneg %p1383_p4 }
 0x36c   : > { %p1391_p11 = pnand %p1390_p12, %p1384_p5 }
 0x36e   : > { %1394 = shalt.err (!%p1391_p11)
}
 0x36f   : > { %1247 = dma.vmem_to_hbm [thread:$0]  (%p1259_p2), %s992_s21, 32, %s1767_s8, [#allocation6]  }
 0x370   : > { %s1405_s27 = scalar_lea.vmem %s1003_s12, 64  ;;  %p1412_p9 = scmp.lt.s32.totalorder %s1003_s12, %s1003_s12 }
 0x371   : > { %p1406_p13 = scmp.ne.s32.totalorder %s1003_s12, %s1405_s27  ;;  %p1413_p8 = scmp.lt.s32.totalorder %s1405_s27, %s1405_s27 }
 0x373   : > { %p1407_p0 = pnand %p1406_p13, %p1259_p2  ;;  %p1414_p1 = por %p1413_p8, %p1412_p9 }
 0x375   : > { %p1408_p7 = pneg %p1407_p0 }
 0x377   : > { %p1415_p3 = pnand %p1414_p1, %p1408_p7 }
 0x379   : > { %1418 = shalt.err (!%p1415_p3)
}
 0x37a   : > { %1249 = dma.vmem_to_hbm [thread:$0]  (%p1259_p2), %s1003_s12, 64, %s1768_s9, [#allocation9]  }
 0x37b   : > { %1450 = dma.done.wait (%p1259_p2), [#allocation6], 32  }
 0x37c   : > { %1452 = vsyncadd (%p1259_p2), [#allocation6], 4294967264 }
 0x37d   : > { %1454 = dma.done.wait (%p1259_p2), [#allocation9], 64  }
 0x37e   : > { %1456 = vsyncadd (%p1259_p2), [#allocation9], 4294967232 }
 0x37f PF: > { %p22_p4 = scmp.ge.s32.totalorder %s1554_s14, 4   ;;  %s1774_s30 = smov %s1463_s10 }
 0x380   : > { %s1775_s10 = smov %s1467_s11  ;;  %s1776_s11 = smov %s1564_s17 }
 0x381   : > { %s1777_s12 = smov %s1554_s14  ;;  %24 = sbr.rel (!%p22_p4) target bundleno = 5 (0x5), region = 108 }
 0x386   :  { %1019 = vsyncpa [#allocation5], 1 }
 0x387   :  { %1021 = vsyncpa [#allocation5 + $0x1], 1 }
 0x388   :  { %1022 = vsyncpa [#allocation6], 1 }
 0x389   :  { %1024 = vsyncpa [#allocation6 + $0x1], 1 }
 0x38a   :  { %1025 = vsyncpa [#allocation9], 1 }

</bundles_post_ra>
